<compile_context>
chip_gen: v6e
topology: v6e:2x2x1
jax: 0.10.0
libtpu: 0.0.40
codegen_flags: <defaults>
</compile_context>

<pallas_src>
import jax
import jax.numpy as jnp
from jax import lax
from jax.experimental import pallas as pl
from jax.experimental.pallas import tpu as pltpu


# ---------------------------------------------------------------------------
# Kernel 1: parallel input projection  xW = x2d @ W_ih^T + (b_ih + b_hh)
# ---------------------------------------------------------------------------
def _input_proj_kernel(x_ref, wih_t_ref, b_ref, xw_ref):
    # x_ref:     (ROW_TILE, I)
    # wih_t_ref: (I, H)   = W_ih^T      (constant index map, resident)
    # b_ref:     (1, H)   = b_ih + b_hh (constant index map, resident)
    # xw_ref:    (ROW_TILE, H)
    xw_ref[...] = (
        jnp.dot(x_ref[...], wih_t_ref[...], preferred_element_type=jnp.float32)
        + b_ref[...]
    ).astype(xw_ref.dtype)


# ---------------------------------------------------------------------------
# Kernel 2: sequential recurrence over chunked time axis
# ---------------------------------------------------------------------------
def _rnn_recurrent_kernel(xw_ref, whh_t_ref, out_ref, h_scr):
    # xw_ref:    (T_CHUNK, B, H)  precomputed x_t @ W_ih^T + bias
    # whh_t_ref: (H, H)           = W_hh^T (resident, constant index map)
    # out_ref:   (T_CHUNK, B, H)  hidden states for this chunk
    # h_scr:     (B, H)           persistent hidden state across grid steps
    @pl.when(pl.program_id(0) == 0)
    def _():
        h_scr[...] = jnp.zeros_like(h_scr)

    t_chunk = xw_ref.shape[0]
    whh_t = whh_t_ref[...]  # hoisted: loaded once per chunk

    def step(t, h):
        z = xw_ref[t] + jnp.dot(h, whh_t, preferred_element_type=jnp.float32)
        h_new = jnp.tanh(z)
        out_ref[t] = h_new.astype(out_ref.dtype)  # write into VMEM out block
        return h_new

    h_final = lax.fori_loop(0, t_chunk, step, h_scr[...], unroll=True)
    h_scr[...] = h_final


# ---------------------------------------------------------------------------
# Helpers
# ---------------------------------------------------------------------------
def _largest_divisor_leq(n, cap):
    c = min(n, cap)
    while n % c != 0:
        c -= 1
    return c


def _pick_row_tile(rows, cap=512):
    if rows <= cap:
        return rows
    for r in range(cap, 7, -1):
        if rows % r == 0 and r % 8 == 0:
            return r
    return rows


# ---------------------------------------------------------------------------
# Wrapper
# ---------------------------------------------------------------------------
def rnn_forward(x, w_ih, w_hh, b_ih, b_hh, *, time_chunk_cap=64):
    """x: (T, B, I) float32. Returns (T*B, H) float32 (matches out.view(-1, H))."""
    T, B, I = x.shape
    H = w_ih.shape[0]

    wih_t = jnp.asarray(w_ih).T                       # (I, H)
    whh_t = jnp.asarray(w_hh).T                       # (H, H)
    b = (b_ih + b_hh).reshape(1, H).astype(jnp.float32)

    # ---- Stage 1: parallel input projection (one big GEMM over T*B rows) ----
    rows = T * B
    row_tile = _pick_row_tile(rows)
    x2d = x.reshape(rows, I)

    xw2d = pl.pallas_call(
        _input_proj_kernel,
        out_shape=jax.ShapeDtypeStruct((rows, H), jnp.float32),
        grid_spec=pltpu.PrefetchScalarGridSpec(
            num_scalar_prefetch=0,
            grid=(rows // row_tile,),
            in_specs=[
                pl.BlockSpec((row_tile, I), lambda r: (r, 0)),
                pl.BlockSpec((I, H), lambda r: (0, 0)),
                pl.BlockSpec((1, H), lambda r: (0, 0)),
            ],
            out_specs=pl.BlockSpec((row_tile, H), lambda r: (r, 0)),
        ),
        compiler_params=pltpu.CompilerParams(
            dimension_semantics=("parallel",),
        ),
    )(x2d, wih_t, b)

    xw = xw2d.reshape(T, B, H)

    # ---- Stage 2: sequential recurrence, chunked over time ----
    t_chunk = _largest_divisor_leq(T, time_chunk_cap)

    out = pl.pallas_call(
        _rnn_recurrent_kernel,
        out_shape=jax.ShapeDtypeStruct((T, B, H), jnp.float32),
        grid_spec=pltpu.PrefetchScalarGridSpec(
            num_scalar_prefetch=0,
            grid=(T // t_chunk,),
            in_specs=[
                pl.BlockSpec((t_chunk, B, H), lambda c: (c, 0, 0)),
                pl.BlockSpec((H, H), lambda c: (0, 0)),
            ],
            out_specs=pl.BlockSpec((t_chunk, B, H), lambda c: (c, 0, 0)),
            scratch_shapes=[pltpu.VMEM((B, H), jnp.float32)],
        ),
        compiler_params=pltpu.CompilerParams(
            # Time chunks are sequential (hidden state carried in VMEM scratch).
            dimension_semantics=("arbitrary",),
        ),
    )(xw, whh_t)

    return out.reshape(-1, H)


# ---------------------------------------------------------------------------
# Pure-JAX reference (same recurrence) for correctness check
# ---------------------------------------------------------------------------
def _reference_rnn(x, w_ih, w_hh, b_ih, b_hh):
    T, B, _ = x.shape
    H = w_ih.shape[0]
    h = jnp.zeros((B, H), jnp.float32)
    outs = []
    for t in range(T):
        h = jnp.tanh(x[t] @ w_ih.T + b_ih + h @ w_hh.T + b_hh)
        outs.append(h)
    return jnp.stack(outs, axis=0).reshape(-1, H)


if __name__ == "__main__":
    batch_size = 1
    hidden_size = 4
    input_size = 4
    num_layer = 1  # single layer, matching the spec
    seq_len = 8

    key = jax.random.PRNGKey(0)
    k1, k2, k3, k4, k5 = jax.random.split(key, 5)

    # Deterministic parameter init (uniform(-1/sqrt(H), 1/sqrt(H)) like torch).
    bound = 1.0 / jnp.sqrt(jnp.float32(hidden_size))
    w_ih = jax.random.uniform(k1, (hidden_size, input_size), jnp.float32, -bound, bound)
    w_hh = jax.random.uniform(k2, (hidden_size, hidden_size), jnp.float32, -bound, bound)
    b_ih = jax.random.uniform(k3, (hidden_size,), jnp.float32, -bound, bound)
    b_hh = jax.random.uniform(k4, (hidden_size,), jnp.float32, -bound, bound)

    x = jax.random.normal(k5, (seq_len, batch_size, input_size), jnp.float32)

    out = rnn_forward(x, w_ih, w_hh, b_ih, b_hh)
    out = jax.block_until_ready(out)

    ref = _reference_rnn(x, w_ih, w_hh, b_ih, b_hh)
    assert out.shape == (seq_len * batch_size, hidden_size), out.shape
    assert jnp.allclose(out, ref, atol=1e-5, rtol=1e-5), "mismatch vs reference"

    print("KERNEL_OK")
</pallas_src>

<mosaic_0001>
module attributes {stable_mosaic.version = 11 : i64} {
  func.func @_input_proj_kernel(%arg0: i32, %arg1: memref<8x4xf32, #tpu.memory_space<vmem>>, %arg2: memref<4x4xf32, #tpu.memory_space<vmem>>, %arg3: memref<1x4xf32, #tpu.memory_space<vmem>>, %arg4: memref<8x4xf32, #tpu.memory_space<vmem>>) attributes {dimension_semantics = [#tpu.dimension_semantics<parallel>], iteration_bounds = array<i64: 1>, scalar_prefetch = 0 : i64, scratch_operands = 0 : i64, tpu.core_type = #tpu.core_type<tc>, window_params = [{transform_indices = @transform_0, window_bounds = array<i64: 8, 4>}, {pipeline_mode = #tpu.pipeline_mode<synchronous>, transform_indices = @transform_1, window_bounds = array<i64: 4, 4>}, {pipeline_mode = #tpu.pipeline_mode<synchronous>, transform_indices = @transform_2, window_bounds = array<i64: 1, 4>}, {transform_indices = @transform_3, window_bounds = array<i64: 8, 4>}]} {
    %c0 = arith.constant 0 : index
    %c0_0 = arith.constant 0 : index
    %0 = vector.load %arg1[%c0, %c0_0] : memref<8x4xf32, #tpu.memory_space<vmem>>, vector<8x4xf32>
    %c0_1 = arith.constant 0 : index
    %c0_2 = arith.constant 0 : index
    %1 = vector.load %arg2[%c0_1, %c0_2] : memref<4x4xf32, #tpu.memory_space<vmem>>, vector<4x4xf32>
    %cst = arith.constant dense<0.000000e+00> : vector<8x4xf32>
    %2 = tpu.matmul %0, %1, %cst {dimension_numbers = #tpu.dot_dimension_numbers<[1], [0], [0], [1], [0, 0, 1, 1], [], []>} : vector<8x4xf32>, vector<4x4xf32>, vector<8x4xf32> -> vector<8x4xf32>
    %c0_3 = arith.constant 0 : index
    %c0_4 = arith.constant 0 : index
    %3 = vector.load %arg3[%c0_3, %c0_4] : memref<1x4xf32, #tpu.memory_space<vmem>>, vector<1x4xf32>
    %4 = vector.broadcast %3 : vector<1x4xf32> to vector<8x4xf32>
    %5 = arith.addf %2, %4 : vector<8x4xf32>
    %c0_5 = arith.constant 0 : index
    %c0_6 = arith.constant 0 : index
    %6 = vector.load %arg4[%c0_5, %c0_6] : memref<8x4xf32, #tpu.memory_space<vmem>>, vector<8x4xf32>
    tpu.vector_store %arg4[%c0_5, %c0_6], %5 {strides = array<i32>} : memref<8x4xf32, #tpu.memory_space<vmem>>, vector<8x4xf32>,
    return
  }
  func.func @transform_0(%arg0: i32) -> (i32, i32) {
    %c0_i32 = arith.constant 0 : i32
    %c0_i32_0 = arith.constant 0 : i32
    return %arg0, %c0_i32 : i32, i32
  }
  func.func @transform_1(%arg0: i32) -> (i32, i32) {
    %c0_i32 = arith.constant 0 : i32
    %c0_i32_0 = arith.constant 0 : i32
    %c0_i32_1 = arith.constant 0 : i32
    return %c0_i32, %c0_i32_0 : i32, i32
  }
  func.func @transform_2(%arg0: i32) -> (i32, i32) {
    %c0_i32 = arith.constant 0 : i32
    %c0_i32_0 = arith.constant 0 : i32
    %c0_i32_1 = arith.constant 0 : i32
    return %c0_i32, %c0_i32_0 : i32, i32
  }
  func.func @transform_3(%arg0: i32) -> (i32, i32) {
    %c0_i32 = arith.constant 0 : i32
    %c0_i32_0 = arith.constant 0 : i32
    return %arg0, %c0_i32 : i32, i32
  }
}

</mosaic_0001>

<bundles_post_ra>
// kernel: tpu_custom_call.1
= control target key start
LH: loop header
LB: loop body
LE: loop exit
PB: predicated region body
PF: predicated region fallthrough
CT: control target
= control target key end

     0   :  { %vm27_vm0 = vcmask 1043456   ;;  %vm23_vm1 = vcmask 31744   ;;  %v118_v0 = vmov 0.0   ;;  %vm119_vm2 = vmmov 0   ;;  %s152_s1 = inlined_call_operand.vmem [shape: f32[4,4], index: 1, kind: input, shape index: {}]   ;;  %s153_s0 = inlined_call_operand.vmem [shape: f32[8,4], index: 0, kind: input, shape index: {}]   ;;  %s154_s2 = inlined_call_operand.vmem [shape: f32[1,4], index: 2, kind: input, shape index: {}]   ;;  %s155_s3 = inlined_call_operand.vmem [shape: f32[8,4], index: 3, kind: output, shape index: {}]  }
   0x1   :  { %111 = vmatprep.subr.mxu0 %v118_v0  ;;  %v15_v1 = vld [vmem:[%s152_s1] sm:$0xf]  ;;  %113 = vmatprep.mubr.msk.f32.mxu0 %vm119_vm2, %v118_v0 }
   0x2   :  { %v14_v2 = vld [vmem:[%s153_s0] sm:$0xff]  ;;  %112 = vmatpush3.msk.msra.mxu0 %vm27_vm0, %v15_v1 }
   0x3   :  { %114 = vmatmul.mubr.msk.f32.vlgmr.msra.gmra.mxu0 %vm23_vm1, %v14_v2  ;;  %v106_v3 = vld [vmem:[%s154_s2] ss:$0 sm:$0xff] }
  0xc3   :  { %v97_v4 = vpop.f32.mrf.mxu0 }
  0xc4   :  { %v98_v5 = vadd.f32 %v106_v3, %v97_v4 }
  0xc5   :  { %v115_v6 = vpop.f32.mrf.mxu0 }
  0xc6   :  { %101 = vst.msk [vmem:[%s155_s3] sm:$0xff] %vm23_vm1, %v98_v5 }

</bundles_post_ra>
